<compile_context>
chip_gen: v6e
topology: v6e:2x2x1
jax: 0.10.0
libtpu: 0.0.40
codegen_flags: <defaults>
</compile_context>

<pallas_src>
import functools

import jax
import jax.numpy as jnp
from jax.experimental import pallas as pl
from jax.experimental.pallas import tpu as pltpu


def _round_up(n, m):
    return ((n + m - 1) // m) * m


def _row_sum_kernel(x_ref, o_ref, *, hw, ct, n_chunks, n_half, ragged, overlap):
    """Accumulate folded per-row partial sums of one (RT, CT) chunk.

    Note: when B*3 is not a multiple of RT, the overhanging rows of x_ref
    contain unspecified pad data that is accumulated unmasked; this is benign
    because the (halves, B*3, CT//2) output window discards those rows and
    the epilogue never reads them.
    """
    p = pl.program_id(0)   # column half (parallel; megacore-shardable)
    k = pl.program_id(2)   # reduction step within the half

    @pl.when(k == 0)
    def _():
        o_ref[...] = jnp.zeros_like(o_ref)

    # DMA stays in the input's native dtype; cast per chunk on the VPU.
    x = x_ref[...].astype(jnp.float32)
    ch = ct // 2

    def accumulate(vals):
        # In-lane fold: one extra vadd, half the accumulator RMW traffic.
        o_ref[...] += (vals[:, :ch] + vals[:, ch:])[None]

    exceptional = None
    if ragged:
        # The globally-last (possibly partial) chunk is always processed by
        # the last half at its last step.
        exceptional = (k == n_half - 1) & (p == pl.num_programs(0) - 1)
    if overlap:
        # Odd chunk count: the second half's first chunk duplicates the first
        # half's last chunk; it must contribute zero.
        skip = (p == 1) & (k == 0)
        exceptional = skip if exceptional is None else (exceptional | skip)

    if exceptional is None:
        accumulate(x)
    else:
        @pl.when(exceptional)
        def _():
            xm = x
            if ragged:
                # Static tail-chunk start.  For the (distinct) overlap chunk
                # this mask is meaningless, but that chunk is zeroed below.
                col = (n_chunks - 1) * ct + jax.lax.broadcasted_iota(
                    jnp.int32, x.shape, 1)
                xm = jnp.where(col < hw, xm, 0.0)
            if overlap:
                xm = jnp.where((p == 1) & (k == 0), 0.0, xm)
            accumulate(xm)

        @pl.when(jnp.logical_not(exceptional))
        def _():
            accumulate(x)


@functools.partial(jax.jit, static_argnames=("block_bytes",))
def l_color(x, *, block_bytes=2 * 1024 * 1024):
    """x: (B, 3, H, W) float array -> (B, 1, 1, 1), dtype of x."""
    b, c, h, w = x.shape
    assert c == 3, "L_color expects 3 channels (RGB)"
    hw = h * w
    rows = b * c
    itemsize = x.dtype.itemsize

    # Flattened contiguous view: one row per (batch, channel).
    xf = x.reshape(rows, hw)

    # --- Tile sizing --------------------------------------------------------
    # Sublane multiple follows dtype packing (8 / 16 / 32 for 4 / 2 / 1 byte).
    sub = max(8, 32 // max(1, itemsize))
    # Rows per block grow with batch: bigger DMAs, fewer grid steps, and a
    # >1-block parallel row axis when B is large.
    rt = min(_round_up(rows, sub), 64)
    # Column chunk: ~block_bytes of input per step (1-2 MiB hits the HBM
    # roofline knee), bounded so 2x input + 2x f32 half-width accumulator
    # stays under ~10 MiB (safe for v5e's 16 MiB default scoped VMEM).
    # Multiple of 256 so the in-lane fold splits on a 128-lane boundary.
    vmem_budget = 10 * 1024 * 1024
    ct_cap = min(block_bytes // (rt * itemsize),
                 vmem_budget // (rt * (2 * itemsize + 4)))
    ct = min(_round_up(hw, 256), max(256, (ct_cap // 256) * 256))
    ch = ct // 2

    n_chunks = pl.cdiv(hw, ct)
    ragged = (hw % ct) != 0

    # --- Column-half split (gives v7x's 2 TensorCores work even at B<=2) ----
    if n_chunks >= 2:
        n_halves = 2
        n_half = pl.cdiv(n_chunks, 2)
        shift = n_chunks - n_half           # starting chunk of the 2nd half
        overlap = (2 * n_half) > n_chunks   # odd chunk count -> 1 dup chunk
    else:
        n_halves, n_half, shift, overlap = 1, n_chunks, 0, False

    grid = (n_halves, pl.cdiv(rows, rt), n_half)

    kernel = functools.partial(
        _row_sum_kernel, hw=hw, ct=ct, n_chunks=n_chunks, n_half=n_half,
        ragged=ragged, overlap=overlap)

    cost = pl.CostEstimate(
        flops=int(rows * hw),
        transcendentals=0,
        bytes_accessed=int(rows * hw * itemsize + n_halves * rows * ch * 4),
    )

    partial = pl.pallas_call(
        kernel,
        out_shape=jax.ShapeDtypeStruct((n_halves, rows, ch), jnp.float32),
        grid=grid,
        in_specs=[pl.BlockSpec((rt, ct), lambda p, i, k: (i, p * shift + k))],
        out_specs=pl.BlockSpec((1, rt, ch), lambda p, i, k: (p, i, 0)),
        compiler_params=pltpu.CompilerParams(
            dimension_semantics=("parallel", "parallel", "arbitrary"),
        ),
        cost_estimate=cost,
    )(xf)

    # Tiny epilogue on the (halves, B*3, CT//2) partial sums.
    means = (jnp.sum(partial, axis=(0, 2)) / float(hw)).reshape(b, c)
    mr, mg, mb = means[:, 0], means[:, 1], means[:, 2]
    drg = (mr - mg) ** 2
    drb = (mr - mb) ** 2
    dgb = (mb - mg) ** 2
    k = jnp.sqrt(drg * drg + drb * drb + dgb * dgb)
    return k.reshape(b, 1, 1, 1).astype(x.dtype)


def _l_color_ref(x):
    # Pure-JAX reference mirroring the PyTorch module.
    mean_rgb = jnp.mean(x.astype(jnp.float32), axis=(2, 3), keepdims=True)
    mr = mean_rgb[:, 0:1]
    mg = mean_rgb[:, 1:2]
    mb = mean_rgb[:, 2:3]
    drg = (mr - mg) ** 2
    drb = (mr - mb) ** 2
    dgb = (mb - mg) ** 2
    return jnp.sqrt(drg ** 2 + drb ** 2 + dgb ** 2).astype(x.dtype)


if __name__ == "__main__":
    def check(x, block_bytes=None, atol=1e-5, rtol=1e-5):
        kwargs = {} if block_bytes is None else {"block_bytes": block_bytes}
        out = l_color(x, **kwargs)
        jax.block_until_ready(out)
        ref = _l_color_ref(x)
        assert out.shape == (x.shape[0], 1, 1, 1), out.shape
        assert jnp.allclose(out.astype(jnp.float32), ref.astype(jnp.float32),
                            atol=atol, rtol=rtol), (out, ref)

    keys = jax.random.split(jax.random.PRNGKey(0), 8)

    # Primary small test (single chunk, no tail).
    check(jax.random.uniform(keys[0], (2, 3, 16, 16), dtype=jnp.float32))
    # Ragged spatial size (H*W < one lane block -> masked tail lanes).
    check(jax.random.uniform(keys[1], (2, 3, 10, 12), dtype=jnp.float32))
    # Larger single ragged chunk.
    check(jax.random.uniform(keys[2], (1, 3, 100, 100), dtype=jnp.float32),
          rtol=1e-4)
    # Two-half column split with the default block size (2 full chunks).
    check(jax.random.uniform(keys[3], (1, 3, 256, 512), dtype=jnp.float32),
          rtol=1e-4)
    # Forced tiny blocks to exercise the split paths at small shapes:
    # even chunk count, odd chunk count (overlap), odd + ragged tail.
    check(jax.random.uniform(keys[4], (2, 3, 32, 32), dtype=jnp.float32),
          block_bytes=8192)
    check(jax.random.uniform(keys[5], (2, 3, 24, 32), dtype=jnp.float32),
          block_bytes=8192)
    check(jax.random.uniform(keys[6], (2, 3, 24, 28), dtype=jnp.float32),
          block_bytes=8192)
    # bf16 input (native-dtype DMA, f32 accumulation, bf16 result like input).
    check(jax.random.uniform(keys[7], (2, 3, 16, 16),
                             dtype=jnp.float32).astype(jnp.bfloat16),
          atol=1e-4, rtol=5e-2)

    print("KERNEL_OK")
</pallas_src>

<mosaic_0001>
module attributes {stable_mosaic.version = 11 : i64} {
  func.func @_row_sum_kernel(%arg0: i32, %arg1: i32, %arg2: i32, %arg3: memref<8x256xf32, #tpu.memory_space<vmem>>, %arg4: memref<1x8x128xf32, #tpu.memory_space<vmem>>) attributes {dimension_semantics = [#tpu.dimension_semantics<parallel>, #tpu.dimension_semantics<parallel>, #tpu.dimension_semantics<arbitrary>], iteration_bounds = array<i64: 1, 1, 1>, scalar_prefetch = 0 : i64, scratch_operands = 0 : i64, tpu.core_type = #tpu.core_type<tc>, window_params = [{transform_indices = @transform_0, window_bounds = array<i64: 8, 256>}, {transform_indices = @transform_1, window_bounds = array<i64: 1, 8, 128>}]} {
    %c0_i32 = arith.constant 0 : i32
    %0 = arith.cmpi eq, %arg2, %c0_i32 : i32
    %1 = arith.extui %0 : i1 to i32
    %c0_i32_0 = arith.constant 0 : i32
    %2 = arith.cmpi ne, %1, %c0_i32_0 : i32
    scf.if %2 {
      %cst = arith.constant 0.000000e+00 : f32
      %11 = vector.broadcast %cst : f32 to vector<1x8x128xf32>
      %c0_8 = arith.constant 0 : index
      %c0_9 = arith.constant 0 : index
      %c0_10 = arith.constant 0 : index
      %12 = vector.load %arg4[%c0_8, %c0_9, %c0_10] : memref<1x8x128xf32, #tpu.memory_space<vmem>>, vector<1x8x128xf32>
      tpu.vector_store %arg4[%c0_8, %c0_9, %c0_10], %11 {strides = array<i32>} : memref<1x8x128xf32, #tpu.memory_space<vmem>>, vector<1x8x128xf32>,
    } else {
    }
    %c0 = arith.constant 0 : index
    %c0_1 = arith.constant 0 : index
    %3 = vector.load %arg3[%c0, %c0_1] : memref<8x256xf32, #tpu.memory_space<vmem>>, vector<8x256xf32>
    %c0_2 = arith.constant 0 : index
    %c0_3 = arith.constant 0 : index
    %c0_4 = arith.constant 0 : index
    %4 = vector.load %arg4[%c0_2, %c0_3, %c0_4] : memref<1x8x128xf32, #tpu.memory_space<vmem>>, vector<1x8x128xf32>
    %5 = vector.extract_strided_slice %3 {offsets = [0, 0], sizes = [8, 128], strides = [1, 1]} : vector<8x256xf32> to vector<8x128xf32>
    %6 = vector.extract_strided_slice %3 {offsets = [0, 128], sizes = [8, 128], strides = [1, 1]} : vector<8x256xf32> to vector<8x128xf32>
    %7 = arith.addf %5, %6 : vector<8x128xf32>
    %8 = vector.shape_cast %7 : vector<8x128xf32> to vector<1x8x128xf32>
    %9 = arith.addf %4, %8 : vector<1x8x128xf32>
    %c0_5 = arith.constant 0 : index
    %c0_6 = arith.constant 0 : index
    %c0_7 = arith.constant 0 : index
    %10 = vector.load %arg4[%c0_5, %c0_6, %c0_7] : memref<1x8x128xf32, #tpu.memory_space<vmem>>, vector<1x8x128xf32>
    tpu.vector_store %arg4[%c0_5, %c0_6, %c0_7], %9 {strides = array<i32>} : memref<1x8x128xf32, #tpu.memory_space<vmem>>, vector<1x8x128xf32>,
    return
  }
  func.func @transform_0(%arg0: i32, %arg1: i32, %arg2: i32) -> (i32, i32) {
    %c0_i32 = arith.constant 0 : i32
    %0 = arith.muli %arg0, %c0_i32 : i32
    %1 = arith.addi %0, %arg2 : i32
    %c0_i32_0 = arith.constant 0 : i32
    return %arg1, %1 : i32, i32
  }
  func.func @transform_1(%arg0: i32, %arg1: i32, %arg2: i32) -> (i32, i32, i32) {
    %c0_i32 = arith.constant 0 : i32
    %c0_i32_0 = arith.constant 0 : i32
    return %arg0, %arg1, %c0_i32 : i32, i32, i32
  }
}

</mosaic_0001>

<bundles_post_ra>
// kernel: l_color.1
= control target key start
LH: loop header
LB: loop body
LE: loop exit
PB: predicated region body
PF: predicated region fallthrough
CT: control target
= control target key end

     0   :  { %s43_s0 = inlined_call_operand.vmem [shape: f32[6,256], index: 0, kind: input, shape index: {}]   ;;  %s44_s1 = inlined_call_operand.vmem [shape: f32[1,6,128], index: 1, kind: output, shape index: {}]  }
   0x1   :  { %v13_v0 = vld [vmem:[%s43_s0] sm:$0xff]  ;;  %v14_v1 = vld [vmem:[%s43_s0 + $0x8] sm:$0xff] }
   0x2   :  { %v16_v2 = vadd.f32 %v14_v1, %v13_v0 }
   0x4   :  { %18 = vst [vmem:[%s44_s1] sm:$0xff] %v16_v2 }

</bundles_post_ra>
